<compile_context>
chip_gen: v7x
topology: tpu7x:2x2x1
jax: 0.10.0
libtpu: 0.0.40
codegen_flags: <defaults>
</compile_context>

<pallas_src>
import functools
import numpy as np

import jax
import jax.numpy as jnp
from jax.experimental import pallas as pl
from jax.experimental.pallas import tpu as pltpu

_VMEM_LIMIT = 32 * 1024 * 1024  # explicit scoped-VMEM limit (safe on v5e/v6e/v7x)


def _round_up(x: int, m: int) -> int:
    return ((x + m - 1) // m) * m


# ----------------------------------------------------------------------------
# Frozen parameters: UV grid + Gaussian Fourier features, produced directly in
# channel-major (M, HW) layout so the per-pixel MLP is lane-dense.
# ----------------------------------------------------------------------------
def get_uv_grid(height: int, width: int) -> np.ndarray:
    y_coords = np.linspace(0, 1, height, endpoint=False)
    x_coords = np.linspace(0, 1, width, endpoint=False)
    uv = np.stack(np.meshgrid(y_coords, x_coords), -1)          # (W, H, 2)
    uv = np.transpose(uv, (2, 1, 0)).astype(np.float32)         # (2, H, W)
    return uv[None]                                             # (1, 2, H, W)


def fourier_features_channel_major(uv: jnp.ndarray, freqs: jnp.ndarray) -> jnp.ndarray:
    # uv: (1, 2, H, W), freqs: (2, F)  ->  (2F, H*W), channels on sublanes,
    # pixels (row-major over H,W, same order as NCHW) on lanes.
    _, cin, H, W = uv.shape
    x = uv[0].reshape(cin, H * W)                               # (2, HW)
    p = 2.0 * jnp.pi * (freqs.T @ x)                            # (F, HW)
    return jnp.concatenate([jnp.sin(p), jnp.cos(p)], axis=0)    # (2F, HW)


# ----------------------------------------------------------------------------
# Kernel 1: per-pixel MLP (1x1 convs + ReLU), channel-major / lane-dense.
#   stage=1,2,3 : cascade up to layer `stage` (BN of earlier layers already
#                 folded into weights), accumulate per-channel sum & sumsq via
#                 one MXU matmul into a resident (1, 2*hidden, 1) accumulator.
#   stage=4     : full cascade + final 1x1 conv, stores (C, tile) lane-dense.
# ----------------------------------------------------------------------------
def _mlp_kernel(feat_ref, w1_ref, b1_ref, w2_ref, b2_ref, w3_ref, b3_ref,
                w4_ref, b4_ref, out_ref, *, stage):
    def layer(w_ref, b_ref, h):
        h = jnp.dot(w_ref[...], h, preferred_element_type=jnp.float32) + b_ref[...]
        return jnp.maximum(h, 0.0)

    h = layer(w1_ref, b1_ref, feat_ref[...])                    # (hidden, tn)
    if stage >= 2:
        h = layer(w2_ref, b2_ref, h)
    if stage >= 3:
        h = layer(w3_ref, b3_ref, h)

    if stage == 4:
        out_ref[...] = (jnp.dot(w4_ref[...], h, preferred_element_type=jnp.float32)
                        + b4_ref[...])                          # (C, tn) lane-dense
    else:
        @pl.when(pl.program_id(1) == 0)
        def _():
            out_ref[...] = jnp.zeros_like(out_ref)
        # MXU reduction over pixels: concat([h, h*h]) @ ones -> (2*hidden, 1)
        hh = jnp.concatenate([h, h * h], axis=0)
        ones = jnp.ones((hh.shape[1], 1), jnp.float32)
        out_ref[...] += jnp.dot(hh, ones, preferred_element_type=jnp.float32)[None]


def _pick_col_tile(hw: int, m: int) -> int:
    # Largest lane tile that divides HW, leaves >= 2 grid steps, and keeps the
    # double-buffered feature stream under ~4 MiB.
    budget = 4 * 1024 * 1024
    for tn in (8192, 4096, 2048, 1024, 512, 256, 128):
        if hw % tn == 0 and hw // tn >= 2 and 2 * 4 * m * tn <= budget:
            return tn
    return hw


def mlp_forward(feat_cm, params):
    # feat_cm: (M, HW) float32  ->  (C, HW) float32 (lane-dense)
    M, HW = feat_cm.shape
    hidden = params["w1"].shape[0]
    C = params["w4"].shape[0]
    eps = 1e-5

    tn = _pick_col_tile(HW, M)
    num_tiles = HW // tn
    nsplit = 2 if (num_tiles % 2 == 0 and num_tiles >= 2) else 1   # v7x dual-TC stats
    tps = num_tiles // nsplit

    pshapes = [(hidden, M), (hidden, 1),
               (hidden, hidden), (hidden, 1),
               (hidden, hidden), (hidden, 1),
               (C, hidden), (C, 1)]
    # Constant-index specs: parameters stay resident in VMEM across the grid.
    const_specs = [pl.BlockSpec(s, lambda *_: (0, 0)) for s in pshapes]

    feat_spec_stats = pl.BlockSpec((M, tn), lambda c, i, tps=tps: (0, c * tps + i))
    feat_spec_apply = pl.BlockSpec((M, tn), lambda i: (0, i))

    w1, b1 = params["w1"], params["b1"]
    w2f, b2f = params["w2"], params["b2"]
    w3f, b3f = params["w3"], params["b3"]
    w4f, b4f = params["w4"], params["b4"]

    def run_stats(stage, w2, b2, w3, b3, w4, b4):
        out = pl.pallas_call(
            functools.partial(_mlp_kernel, stage=stage),
            out_shape=jax.ShapeDtypeStruct((nsplit, 2 * hidden, 1), jnp.float32),
            grid=(nsplit, tps),
            in_specs=[feat_spec_stats] + const_specs,
            out_specs=pl.BlockSpec((1, 2 * hidden, 1), lambda c, i: (c, 0, 0)),
            compiler_params=pltpu.CompilerParams(
                dimension_semantics=("parallel", "arbitrary"),
                vmem_limit_bytes=_VMEM_LIMIT),
        )(feat_cm, w1, b1, w2, b2, w3, b3, w4, b4)
        sums = jnp.sum(out, axis=0)[:, 0]                        # (2*hidden,)
        return sums[:hidden], sums[hidden:]

    def fold_bn(gamma, beta, s, sq, w_next, b_next):
        # Training-mode BatchNorm2d: batch stats over all HW pixels, biased
        # variance, eps=1e-5; folded into the next layer's weights/bias.
        # TODO(synk): E[x^2]-E[x]^2 in one f32 pass can cancel for very large
        # images; a two-pass (mean then centered sumsq) variant is exacter.
        mean = s / HW
        var = jnp.maximum(sq / HW - mean * mean, 0.0)
        sc = gamma * jax.lax.rsqrt(var + eps)                    # (hidden,)
        sh = beta - mean * sc                                    # (hidden,)
        return w_next * sc[None, :], b_next + w_next @ sh[:, None]

    s1, q1 = run_stats(1, w2f, b2f, w3f, b3f, w4f, b4f)
    w2f, b2f = fold_bn(params["g1"], params["be1"], s1, q1, params["w2"], params["b2"])
    s2, q2 = run_stats(2, w2f, b2f, w3f, b3f, w4f, b4f)
    w3f, b3f = fold_bn(params["g2"], params["be2"], s2, q2, params["w3"], params["b3"])
    s3, q3 = run_stats(3, w2f, b2f, w3f, b3f, w4f, b4f)
    w4f, b4f = fold_bn(params["g3"], params["be3"], s3, q3, params["w4"], params["b4"])

    out = pl.pallas_call(
        functools.partial(_mlp_kernel, stage=4),
        out_shape=jax.ShapeDtypeStruct((C, HW), jnp.float32),
        grid=(num_tiles,),
        in_specs=[feat_spec_apply] + const_specs,
        out_specs=pl.BlockSpec((C, tn), lambda i: (0, i)),
        compiler_params=pltpu.CompilerParams(
            dimension_semantics=("parallel",),
            vmem_limit_bytes=_VMEM_LIMIT),
    )(feat_cm, w1, b1, w2f, b2f, w3f, b3f, w4f, b4f)
    return out                                                   # (C, HW)


# ----------------------------------------------------------------------------
# Kernel 2: cross-bilateral blur + sigmoid.
# Row-tiled, halo slabs streamed from HBM with a manual double-buffered DMA.
# Canvas layout (wrapper): T zero rows above/below (T = round_up(R, 8)), zero
# lane padding up to Wp = round_up(W, 128).
# ----------------------------------------------------------------------------
def _blur_kernel(img_hbm, gui_hbm, out_ref, ibuf, gbuf, sem, *,
                 H, W, R, T, tile_h, rows, Wp, inv2sc2, inv2ss2):
    i = pl.program_id(0)
    n = pl.num_programs(0)

    def start_fetch(step, slot):
        r0 = step * tile_h
        pltpu.make_async_copy(img_hbm.at[:, pl.ds(r0, rows), :],
                              ibuf.at[slot], sem.at[0, slot]).start()
        pltpu.make_async_copy(gui_hbm.at[:, pl.ds(r0, rows), :],
                              gbuf.at[slot], sem.at[1, slot]).start()

    @pl.when(i == 0)
    def _():
        start_fetch(0, 0)                                        # prime slot 0

    slot = i % 2
    pltpu.make_async_copy(img_hbm.at[:, pl.ds(0, rows), :],
                          ibuf.at[slot], sem.at[0, slot]).wait()
    pltpu.make_async_copy(gui_hbm.at[:, pl.ds(0, rows), :],
                          gbuf.at[slot], sem.at[1, slot]).wait()

    @pl.when(i + 1 < n)
    def _():
        start_fetch(i + 1, 1 - slot)                             # prefetch next slab

    img = ibuf[slot]                                             # (C,  rows, Wp)
    gui = gbuf[slot]                                             # (Cg, rows, Wp)
    C = img.shape[0]

    guide_c = gui[:, T:T + tile_h, :]                            # aligned center slice

    row0 = i * tile_h
    r_ids = jax.lax.broadcasted_iota(jnp.int32, (1, tile_h, 1), 1) + row0
    c_ids = jax.lax.broadcasted_iota(jnp.int32, (1, 1, Wp), 2)

    num = jnp.zeros((C, tile_h, Wp), jnp.float32)
    den = jnp.zeros((1, tile_h, Wp), jnp.float32)

    # TODO(synk): on v6e/v7x the diff/exponent/weight path could run in bf16
    # (f32 accumulation kept) for ~2x VPU throughput; kept f32 for v5e safety.
    for dy in range(-R, R + 1):
        if dy == 0:
            img_y = img[:, T:T + tile_h, :]
            gui_y = gui[:, T:T + tile_h, :]
        else:
            sh_y = (-dy) % rows                                  # non-negative shift
            img_y = pltpu.roll(img, sh_y, axis=1)[:, T:T + tile_h, :]
            gui_y = pltpu.roll(gui, sh_y, axis=1)[:, T:T + tile_h, :]
        rowv = ((r_ids + dy >= 0) & (r_ids + dy < H)).astype(jnp.float32)
        for dx in range(-R, R + 1):
            if dx == 0:
                i_sh, g_sh = img_y, gui_y
            else:
                sh_x = (-dx) % Wp                                # non-negative shift
                i_sh = pltpu.roll(img_y, sh_x, axis=2)
                g_sh = pltpu.roll(gui_y, sh_x, axis=2)
            colv = ((c_ids + dx >= 0) & (c_ids + dx < W)).astype(jnp.float32)
            diff = guide_c - g_sh
            d2 = jnp.sum(diff * diff, axis=0, keepdims=True)     # (1, tile_h, Wp)
            log_sw = -float(dy * dy + dx * dx) * inv2ss2         # spatial term folded
            w = jnp.exp(log_sw - d2 * inv2sc2) * (rowv * colv)
            num = num + w * i_sh
            den = den + w

    res = num / jnp.maximum(den, 1e-20)                          # den >= 1 on valid cols
    out_ref[...] = 0.5 * (jnp.tanh(0.5 * res) + 1.0)             # exact sigmoid via tanh


def _pick_tile_h(H: int) -> int:
    for th in (256, 128, 64, 32, 16, 8):
        if H % th == 0 and H // th >= 2:
            return th
    return H


def bilateral_blur_sigmoid(img, guide, *, kernel_size, sigma_space, sigma_color):
    # img: (C, H, W), guide: (Cg, H, W)
    C, H, W = img.shape
    Cg = guide.shape[0]
    R = kernel_size // 2
    T = _round_up(max(R, 1), 8)          # top/bottom zero pad, sublane-aligned halo
    Wp = _round_up(W, 128)               # lane-dense padded width
    tile_h = _pick_tile_h(H)
    rows = tile_h + 2 * T

    img_pad = jnp.pad(img, ((0, 0), (T, T), (0, Wp - W)))
    gui_pad = jnp.pad(guide, ((0, 0), (T, T), (0, Wp - W)))

    kernel = functools.partial(
        _blur_kernel, H=H, W=W, R=R, T=T, tile_h=tile_h, rows=rows, Wp=Wp,
        inv2sc2=float(1.0 / (2.0 * sigma_color * sigma_color)),
        inv2ss2=float(1.0 / (2.0 * sigma_space * sigma_space)))

    out = pl.pallas_call(
        kernel,
        out_shape=jax.ShapeDtypeStruct((C, H, Wp), jnp.float32),
        grid=(H // tile_h,),
        in_specs=[pl.BlockSpec(memory_space=pl.ANY),     # full canvases stay in HBM
                  pl.BlockSpec(memory_space=pl.ANY)],
        out_specs=pl.BlockSpec((C, tile_h, Wp), lambda i: (0, i, 0)),
        scratch_shapes=[pltpu.VMEM((2, C, rows, Wp), jnp.float32),
                        pltpu.VMEM((2, Cg, rows, Wp), jnp.float32),
                        pltpu.SemaphoreType.DMA((2, 2))],
        compiler_params=pltpu.CompilerParams(
            dimension_semantics=("arbitrary",),          # manual double-buffer: sequential
            vmem_limit_bytes=_VMEM_LIMIT),
    )(img_pad, gui_pad)
    return out[:, :, :W]                                 # drop lane padding


# ----------------------------------------------------------------------------
# Full forward (equivalent to LearnableImageFourierBilateral.forward(None))
# ----------------------------------------------------------------------------
def forward(feat_cm, params, guide_image, H, W, *,
            kernel_size, sigma_space, sigma_color):
    out_flat = mlp_forward(feat_cm, params)                      # (C, HW) lane-dense
    img = out_flat.reshape(out_flat.shape[0], H, W)              # free reshape == squeeze(0)
    return bilateral_blur_sigmoid(img, guide_image,
                                  kernel_size=kernel_size,
                                  sigma_space=sigma_space,
                                  sigma_color=sigma_color)


if __name__ == "__main__":
    # Small, deterministic configuration.
    H, W = 16, 16
    num_channels = 3
    hidden_dim = 32
    num_features = 16
    scale = 10.0
    M = 2 * num_features

    key = jax.random.PRNGKey(0)
    ks = jax.random.split(key, 10)

    # Frozen GaussianFourierFeatureTransform parameters + features.
    freqs = jax.random.normal(ks[0], (2, num_features), jnp.float32) * scale
    uv = jnp.asarray(get_uv_grid(H, W))                          # (1, 2, H, W)
    feat_cm = fourier_features_channel_major(uv, freqs)          # (2F, HW)

    # MLP parameters.  PyTorch Conv2d 1x1 weight (O, I, 1, 1) maps directly to
    # the channel-major (O, I) layout used here.
    def winit(k, o, i):
        return jax.random.normal(k, (o, i), jnp.float32) * np.sqrt(2.0 / i)

    params = {
        "w1": winit(ks[1], hidden_dim, M),
        "b1": jax.random.normal(ks[2], (hidden_dim, 1), jnp.float32) * 0.01,
        "g1": jnp.ones((hidden_dim,), jnp.float32),
        "be1": jnp.zeros((hidden_dim,), jnp.float32),
        "w2": winit(ks[3], hidden_dim, hidden_dim),
        "b2": jax.random.normal(ks[4], (hidden_dim, 1), jnp.float32) * 0.01,
        "g2": jnp.ones((hidden_dim,), jnp.float32),
        "be2": jnp.zeros((hidden_dim,), jnp.float32),
        "w3": winit(ks[5], hidden_dim, hidden_dim),
        "b3": jax.random.normal(ks[6], (hidden_dim, 1), jnp.float32) * 0.01,
        "g3": jnp.ones((hidden_dim,), jnp.float32),
        "be3": jnp.zeros((hidden_dim,), jnp.float32),
        "w4": winit(ks[7], num_channels, hidden_dim),
        "b4": jax.random.normal(ks[8], (num_channels, 1), jnp.float32) * 0.01,
    }

    # bilateral_blur.image : guidance image (3, H, W), deterministic.
    guide_image = jax.random.uniform(ks[9], (3, H, W), jnp.float32)

    out = forward(feat_cm, params, guide_image, H, W,
                  kernel_size=5, sigma_space=2.0, sigma_color=0.2)
    out = jax.block_until_ready(out)

    assert out.shape == (num_channels, H, W)
    assert bool(jnp.all(jnp.isfinite(out)))
    assert bool(jnp.all((out >= 0.0) & (out <= 1.0)))
    print("KERNEL_OK")
</pallas_src>

<mosaic_0001>
module attributes {stable_mosaic.version = 11 : i64} {
  func.func @_mlp_kernel(%arg0: i32, %arg1: i32, %arg2: memref<32x128xf32, #tpu.memory_space<vmem>>, %arg3: memref<32x32xf32, #tpu.memory_space<vmem>>, %arg4: memref<32x1xf32, #tpu.memory_space<vmem>>, %arg5: memref<32x32xf32, #tpu.memory_space<vmem>>, %arg6: memref<32x1xf32, #tpu.memory_space<vmem>>, %arg7: memref<32x32xf32, #tpu.memory_space<vmem>>, %arg8: memref<32x1xf32, #tpu.memory_space<vmem>>, %arg9: memref<3x32xf32, #tpu.memory_space<vmem>>, %arg10: memref<3x1xf32, #tpu.memory_space<vmem>>, %arg11: memref<1x64x1xf32, #tpu.memory_space<vmem>>) attributes {dimension_semantics = [#tpu.dimension_semantics<parallel>, #tpu.dimension_semantics<arbitrary>], iteration_bounds = array<i64: 2, 1>, scalar_prefetch = 0 : i64, scratch_operands = 0 : i64, tpu.core_type = #tpu.core_type<tc>, window_params = [{transform_indices = @transform_0, window_bounds = array<i64: 32, 128>}, {pipeline_mode = #tpu.pipeline_mode<synchronous>, transform_indices = @transform_1, window_bounds = array<i64: 32, 32>}, {pipeline_mode = #tpu.pipeline_mode<synchronous>, transform_indices = @transform_2, window_bounds = array<i64: 32, 1>}, {pipeline_mode = #tpu.pipeline_mode<synchronous>, transform_indices = @transform_3, window_bounds = array<i64: 32, 32>}, {pipeline_mode = #tpu.pipeline_mode<synchronous>, transform_indices = @transform_4, window_bounds = array<i64: 32, 1>}, {pipeline_mode = #tpu.pipeline_mode<synchronous>, transform_indices = @transform_5, window_bounds = array<i64: 32, 32>}, {pipeline_mode = #tpu.pipeline_mode<synchronous>, transform_indices = @transform_6, window_bounds = array<i64: 32, 1>}, {pipeline_mode = #tpu.pipeline_mode<synchronous>, transform_indices = @transform_7, window_bounds = array<i64: 3, 32>}, {pipeline_mode = #tpu.pipeline_mode<synchronous>, transform_indices = @transform_8, window_bounds = array<i64: 3, 1>}, {transform_indices = @transform_9, window_bounds = array<i64: 1, 64, 1>}]} {
    %c0 = arith.constant 0 : index
    %c0_0 = arith.constant 0 : index
    %0 = vector.load %arg2[%c0, %c0_0] : memref<32x128xf32, #tpu.memory_space<vmem>>, vector<32x128xf32>
    %c0_1 = arith.constant 0 : index
    %c0_2 = arith.constant 0 : index
    %1 = vector.load %arg3[%c0_1, %c0_2] : memref<32x32xf32, #tpu.memory_space<vmem>>, vector<32x32xf32>
    %cst = arith.constant dense<0.000000e+00> : vector<32x128xf32>
    %2 = tpu.matmul %1, %0, %cst {dimension_numbers = #tpu.dot_dimension_numbers<[1], [0], [0], [1], [0, 0, 1, 1], [], []>} : vector<32x32xf32>, vector<32x128xf32>, vector<32x128xf32> -> vector<32x128xf32>
    %c0_3 = arith.constant 0 : index
    %c0_4 = arith.constant 0 : index
    %3 = vector.load %arg4[%c0_3, %c0_4] : memref<32x1xf32, #tpu.memory_space<vmem>>, vector<32x1xf32>
    %4 = vector.broadcast %3 : vector<32x1xf32> to vector<32x128xf32>
    %5 = arith.addf %2, %4 : vector<32x128xf32>
    %cst_5 = arith.constant 0.000000e+00 : f32
    %6 = vector.broadcast %cst_5 : f32 to vector<32x128xf32>
    %7 = arith.maximumf %5, %6 : vector<32x128xf32>
    %c0_i32 = arith.constant 0 : i32
    %8 = arith.cmpi eq, %arg1, %c0_i32 : i32
    %9 = arith.extui %8 : i1 to i32
    %c0_i32_6 = arith.constant 0 : i32
    %10 = arith.cmpi ne, %9, %c0_i32_6 : i32
    scf.if %10 {
      %cst_15 = arith.constant 0.000000e+00 : f32
      %19 = vector.broadcast %cst_15 : f32 to vector<1x64x1xf32>
      %c0_16 = arith.constant 0 : index
      %c0_17 = arith.constant 0 : index
      %c0_18 = arith.constant 0 : index
      %20 = vector.load %arg11[%c0_16, %c0_17, %c0_18] : memref<1x64x1xf32, #tpu.memory_space<vmem>>, vector<1x64x1xf32>
      tpu.vector_store %arg11[%c0_16, %c0_17, %c0_18], %19 {strides = array<i32>} : memref<1x64x1xf32, #tpu.memory_space<vmem>>, vector<1x64x1xf32>,
    } else {
    }
    %11 = arith.mulf %7, %7 : vector<32x128xf32>
    %12 = tpu.concatenate %7, %11 in 0 : vector<32x128xf32>, vector<32x128xf32> -> vector<64x128xf32>
    %cst_7 = arith.constant 1.000000e+00 : f32
    %13 = vector.broadcast %cst_7 : f32 to vector<128x1xf32>
    %c0_8 = arith.constant 0 : index
    %c0_9 = arith.constant 0 : index
    %c0_10 = arith.constant 0 : index
    %14 = vector.load %arg11[%c0_8, %c0_9, %c0_10] : memref<1x64x1xf32, #tpu.memory_space<vmem>>, vector<1x64x1xf32>
    %cst_11 = arith.constant dense<0.000000e+00> : vector<64x1xf32>
    %15 = tpu.matmul %12, %13, %cst_11 {dimension_numbers = #tpu.dot_dimension_numbers<[1], [0], [0], [1], [0, 0, 1, 1], [], []>} : vector<64x128xf32>, vector<128x1xf32>, vector<64x1xf32> -> vector<64x1xf32>
    %16 = vector.shape_cast %15 : vector<64x1xf32> to vector<1x64x1xf32>
    %17 = arith.addf %14, %16 : vector<1x64x1xf32>
    %c0_12 = arith.constant 0 : index
    %c0_13 = arith.constant 0 : index
    %c0_14 = arith.constant 0 : index
    %18 = vector.load %arg11[%c0_12, %c0_13, %c0_14] : memref<1x64x1xf32, #tpu.memory_space<vmem>>, vector<1x64x1xf32>
    tpu.vector_store %arg11[%c0_12, %c0_13, %c0_14], %17 {strides = array<i32>} : memref<1x64x1xf32, #tpu.memory_space<vmem>>, vector<1x64x1xf32>,
    return
  }
  func.func @transform_0(%arg0: i32, %arg1: i32) -> (i32, i32) {
    %c1_i32 = arith.constant 1 : i32
    %0 = arith.muli %arg0, %c1_i32 : i32
    %1 = arith.addi %0, %arg1 : i32
    %c0_i32 = arith.constant 0 : i32
    %c0_i32_0 = arith.constant 0 : i32
    return %c0_i32, %1 : i32, i32
  }
  func.func @transform_1(%arg0: i32, %arg1: i32) -> (i32, i32) {
    %c0_i32 = arith.constant 0 : i32
    %c0_i32_0 = arith.constant 0 : i32
    %c0_i32_1 = arith.constant 0 : i32
    return %c0_i32, %c0_i32_0 : i32, i32
  }
  func.func @transform_2(%arg0: i32, %arg1: i32) -> (i32, i32) {
    %c0_i32 = arith.constant 0 : i32
    %c0_i32_0 = arith.constant 0 : i32
    %c0_i32_1 = arith.constant 0 : i32
    return %c0_i32, %c0_i32_0 : i32, i32
  }
  func.func @transform_3(%arg0: i32, %arg1: i32) -> (i32, i32) {
    %c0_i32 = arith.constant 0 : i32
    %c0_i32_0 = arith.constant 0 : i32
    %c0_i32_1 = arith.constant 0 : i32
    return %c0_i32, %c0_i32_0 : i32, i32
  }
  func.func @transform_4(%arg0: i32, %arg1: i32) -> (i32, i32) {
    %c0_i32 = arith.constant 0 : i32
    %c0_i32_0 = arith.constant 0 : i32
    %c0_i32_1 = arith.constant 0 : i32
    return %c0_i32, %c0_i32_0 : i32, i32
  }
  func.func @transform_5(%arg0: i32, %arg1: i32) -> (i32, i32) {
    %c0_i32 = arith.constant 0 : i32
    %c0_i32_0 = arith.constant 0 : i32
    %c0_i32_1 = arith.constant 0 : i32
    return %c0_i32, %c0_i32_0 : i32, i32
  }
  func.func @transform_6(%arg0: i32, %arg1: i32) -> (i32, i32) {
    %c0_i32 = arith.constant 0 : i32
    %c0_i32_0 = arith.constant 0 : i32
    %c0_i32_1 = arith.constant 0 : i32
    return %c0_i32, %c0_i32_0 : i32, i32
  }
  func.func @transform_7(%arg0: i32, %arg1: i32) -> (i32, i32) {
    %c0_i32 = arith.constant 0 : i32
    %c0_i32_0 = arith.constant 0 : i32
    %c0_i32_1 = arith.constant 0 : i32
    return %c0_i32, %c0_i32_0 : i32, i32
  }
  func.func @transform_8(%arg0: i32, %arg1: i32) -> (i32, i32) {
    %c0_i32 = arith.constant 0 : i32
    %c0_i32_0 = arith.constant 0 : i32
    %c0_i32_1 = arith.constant 0 : i32
    return %c0_i32, %c0_i32_0 : i32, i32
  }
  func.func @transform_9(%arg0: i32, %arg1: i32) -> (i32, i32, i32) {
    %c0_i32 = arith.constant 0 : i32
    %c0_i32_0 = arith.constant 0 : i32
    %c0_i32_1 = arith.constant 0 : i32
    return %arg0, %c0_i32, %c0_i32_0 : i32, i32, i32
  }
}

</mosaic_0001>

<bundles_post_ra>
// kernel: tpu_custom_call.1
= control target key start
LH: loop header
LB: loop body
LE: loop exit
PB: predicated region body
PF: predicated region fallthrough
CT: control target
= control target key end

     0   :  { %14 = vsyncpa [#allocation4], 0  ;;  %s1390_s0 = inlined_call_operand.vmem [shape: f32[32,256], index: 0, kind: input, shape index: {}]   ;;  %s1391_s1 = inlined_call_operand.vmem [shape: f32[32,32], index: 1, kind: input, shape index: {}]   ;;  %s1392_s2 = inlined_call_operand.vmem [shape: f32[32,1], index: 2, kind: input, shape index: {}]   ;;  %s1393_s3 = inlined_call_operand.hbm [shape: f32[32,32], index: 3, kind: input, shape index: {}]   ;;  %s1394_s4 = inlined_call_operand.vmem [shape: f32[32,1], index: 4, kind: input, shape index: {}]   ;;  %s1395_s5 = inlined_call_operand.hbm [shape: f32[32,32], index: 5, kind: input, shape index: {}]   ;;  %s1396_s6 = inlined_call_operand.vmem [shape: f32[32,1], index: 6, kind: input, shape index: {}]   ;;  %s1397_s7 = inlined_call_operand.vmem [shape: f32[3,32], index: 7, kind: input, shape index: {}]   ;;  %s1398_s8 = inlined_call_operand.vmem [shape: f32[3,1], index: 8, kind: input, shape index: {}]   ;;  %s1399_s9 = inlined_call_operand.vmem [shape: f32[2,64,1], index: 9, kind: output, shape index: {}]  }
   0x1   :  { %15 = vsyncpa [#allocation6], 0  ;;  %s1179_s30 = smov 0   ;;  %s1181_s4 = smov 0  }
   0x2   :  { %s1183_s10 = smov 0   ;;  %s1185_s11 = smov 0  }
   0x3   :  { %s1187_s6 = smov 0  }
   0x4 LB: > { %s799_s7 = sadd.s32 4294967295, %s1120_s6   ;;  %s33_s8 = sadd.s32 1, %s1116_s11  ;;  %s1120_s6 = sphi %s1187_s6, %s21_s6   ;;  %s1116_s11 = sphi %s1185_s11, %s1413_s11   ;;  %s1112_s10 = sphi %s1183_s10, %s1412_s10   ;;  %s1108_s4 = sphi %s1181_s4, %s1411_s4   ;;  %s1104_s30 = sphi %s1179_s30, %s1410_s30  }
   0x5   : > { %p35_p0 = scmp.ge.s32.totalorder %s33_s8, 2  ;;  %s42_s12 = sadd.s32 1, %s1108_s4 }
   0x6   : > { %p49_p1 = scmp.ne.s32.totalorder %s1108_s4, %s1104_s30  ;;  %p50_p2 = scmp.eq.s32.totalorder %s1120_s6, 0 }
   0x7   : > { %s1415_s8 = smov (%p35_p0, %s33_s8), 0  ;;  %p801_p4 = scmp.ge.s32.totalorder %s1120_s6, 1 }
   0x8   : > { %p1212_p3 = por %p50_p2, %p49_p1  ;;  %s39_s14 = ssub.s32 %s1116_s11, %s1415_s8 }
   0x9   : > { %p260_p5 = scmp.lt.s32.totalorder %s1120_s6, 3  ;;  %p40_p6 = scmp.eq.s32.totalorder %s39_s14, 0 }
   0xa   : > { %s1403_s13 = scalar_select %p1212_p3, 1, 0 }
   0xb   : > { %p1220_p7 = pnand %p801_p4, %p260_p5  ;;  %p1224_p8 = scmp.eq.s32.totalorder %s799_s7, 0 }
   0xc   : > { %s1229_s17 = scalar_select %p40_p6, %s1108_s4, %s42_s12  }
   0xd   : > { %s1404_s15 = scalar_select %p1220_p7, 1, 0 }
   0xe   : > { %s1405_s16 = scalar_select %p1224_p8, 1, 0 }
   0xf   : > { %p958_p9 = pneg %p1220_p7  ;;  %s1122_s18 = smov [#allocation3]  }
  0x10   : > { %s278_s19 = sshll.u32 %s1122_s18, 4  ;;  %s1123_s21 = smov [#allocation5]   ;;  %s279_s19 = int_to_ptr.vmem [resolvable:$true] %s278_s19 }
  0x11   : > { %p1235_p10 = pnand %p1224_p8, %p958_p9  ;;  %s294_s22 = sshll.u32 %s1123_s21, 4  ;;  %s295_s22 = int_to_ptr.vmem [resolvable:$true] %s294_s22 }
  0x12   : > { %s1018_s25 = scalar_lea.hbm %s1393_s3, 512 }
  0x13   : > { %p1019_p11 = scmp.ne.s32.totalorder %s1393_s3, %s1018_s25  ;;  %p1020_p12 = pneg %p1235_p10 }
  0x14   : > { %p1025_p1 = scmp.lt.u32.totalorder %s1018_s25, %s1393_s3 }
  0x15   : > { %p1021_p13 = pnand %p1020_p12, %p1019_p11 }
  0x17   : > { %p1022_p0 = pneg %p1021_p13 }
  0x19   : > { %p1027_p2 = pnand %p1025_p1, %p1022_p0 }
  0x1b   : > { %1030 = shalt.err (!%p1027_p2)
}
  0x1c   : > { %s1031_s7 = scalar_lea.vmem %s279_s19, 512  ;;  %p1039_p9 = scmp.lt.s32.totalorder %s279_s19, %s279_s19 }
  0x1d   : > { %p1032_p4 = scmp.ne.s32.totalorder %s279_s19, %s1031_s7  ;;  %p1040_p8 = scmp.lt.s32.totalorder %s1031_s7, %s1031_s7 }
  0x1f   : > { %p1034_p5 = pnand %p1032_p4, %p1020_p12  ;;  %p1041_p7 = por %p1040_p8, %p1039_p9 }
  0x21   : > { %p1035_p6 = pneg %p1034_p5 }
  0x23   : > { %p1042_p3 = pnand %p1041_p7, %p1035_p6 }
  0x25   : > { %1045 = shalt.err (!%p1042_p3)
}
  0x26   : > { %s1124_s12 = smov 128   ;;  %s1125_s14 = smov 8  }
  0x27   : > { %961 = dma.hbm_to_vmem [thread:$0]  (!%p1235_p10), %s1393_s3, 512, %s279_s19, [#allocation4], %s1124_s12, %s1124_s12, %s1125_s14  }
  0x28   : > { %s1046_s25 = scalar_lea.hbm %s1395_s5, 512 }
  0x29   : > { %p1047_p8 = scmp.ne.s32.totalorder %s1395_s5, %s1046_s25  ;;  %p1053_p11 = scmp.lt.u32.totalorder %s1046_s25, %s1395_s5 }
  0x2b   : > { %p1049_p3 = pnand %p1047_p8, %p1020_p12 }
  0x2d   : > { %p1050_p7 = pneg %p1049_p3 }
  0x2f   : > { %p1055_p13 = pnand %p1053_p11, %p1050_p7 }
  0x31   : > { %1058 = shalt.err (!%p1055_p13)
}
  0x32   : > { %s1059_s19 = scalar_lea.vmem %s295_s22, 512  ;;  %p1067_p4 = scmp.lt.s32.totalorder %s295_s22, %s295_s22 }
  0x33   : > { %p1060_p0 = scmp.ne.s32.totalorder %s295_s22, %s1059_s19  ;;  %p1068_p5 = scmp.lt.s32.totalorder %s1059_s19, %s1059_s19 }
  0x35   : > { %p1062_p1 = pnand %p1060_p0, %p1020_p12  ;;  %p1069_p6 = por %p1068_p5, %p1067_p4 }
  0x37   : > { %p1063_p2 = pneg %p1062_p1 }
  0x39   : > { %p1070_p9 = pnand %p1069_p6, %p1063_p2 }
  0x3b   : > { %1073 = shalt.err (!%p1070_p9)
}
  0x3c   : > { %964 = dma.hbm_to_vmem [thread:$0]  (!%p1235_p10), %s1395_s5, 512, %s295_s22, [#allocation6], %s1124_s12, %s1124_s12, %s1125_s14  }
  0x3d   : > { %p804_p8 = scmp.ge.s32.totalorder %s1120_s6, 2 }
  0x3e   : > { %p1407_p3 = scmp.ne.s32.totalorder (!%p804_p8), %s1403_s13, 0 }
  0x3f   : > { %313 = sbr.rel (%p804_p8) target bundleno = 77 (0x4d), region = 48 }
  0x46   : > { %316 = sbr.rel (!%p1407_p3) target bundleno = 77 (0x4d), region = 52  ;;  %s318_s21 = sand.u32 (%p1407_p3), 1, %s1108_s4  }
  0x47   : > { %s806_s23 = sshll.u32 (%p1407_p3), %s1116_s11, 3  ;;  %s805_s24 = sshll.u32 (%p1407_p3), %s318_s21, 5 }
  0x48   : > { %s323_s27 = scalar_lea.vmem (%p1407_p3), %s1390_s0, %s806_s23  ;;  %s320_s20 = scalar_lea.vmem (%p1407_p3), [#allocation2], %s805_s24 }
  0x49   : > { %v357_v0 = vld [vmem:[%s323_s27] sm:$0xff] (%p1407_p3)  ;;  %v359_v1 = vld [vmem:[%s323_s27 + $0x10] sm:$0xff] (%p1407_p3) }
  0x4a   : > { %v361_v2 = vld [vmem:[%s323_s27 + $0x20] sm:$0xff] (%p1407_p3)  ;;  %358 = vst [vmem:[%s320_s20] sm:$0xff] (%p1407_p3), %v357_v0  ;;  %360 = vst [vmem:[%s320_s20 + $0x8] sm:$0xff] (%p1407_p3), %v359_v1  ;;  %v363_v3 = vld [vmem:[%s323_s27 + $0x30] sm:$0xff] (%p1407_p3) }
  0x4b   : > { %362 = vst [vmem:[%s320_s20 + $0x10] sm:$0xff] (%p1407_p3), %v361_v2  ;;  %364 = vst [vmem:[%s320_s20 + $0x18] sm:$0xff] (%p1407_p3), %v363_v3 }
  0x4d PF: > { %p1408_p10 = scmp.ne.s32.totalorder %s1404_s15, 0 }
  0x4e   : > { %s376_s13 = sand.u32 (!%p1408_p10), 1, %s1104_s30   ;;  %p1409_p12 = scmp.ne.s32.totalorder (!%p1408_p10), %s1405_s16, 0 }
  0x4f   : > { %373 = sbr.rel (%p1408_p10) target bundleno = 547 (0x223), region = 90  ;;  %s808_s22 = sshll.u32 (!%p1408_p10), %s376_s13, 5 }
  0x50   : > { %s378_s12 = scalar_lea.vmem (!%p1408_p10), [#allocation2], %s808_s22 }
  0x56   : > { %1095 = dma.done.wait (%p1409_p12), [#allocation4], 512  }
  0x57   : > { %1097 = vsyncadd (%p1409_p12), [#allocation4], 4294966784 }
  0x58   : > { %1099 = dma.done.wait (%p1409_p12), [#allocation6], 512  }
  0x59   : > { %1101 = vsyncadd (%p1409_p12), [#allocation6], 4294966784  ;;  %v1126_v4 = vmov 0   ;;  %v1127_v5 = vmov 1.0|1.0   ;;  %vm457_vm0 = vcmask 261120  }
  0x5a   : > { %1017 = vset.pattern.permute.xlu1 %v1126_v4  ;;  %1016 = vset.pattern.permute.xlu0 %v1126_v4  ;;  %v425_v6 = vld [vmem:[%s378_s12] sm:$0xff]  ;;  %v426_v7 = vld [vmem:[%s378_s12 + $0x8] sm:$0xff]  ;;  %v427_v8 = vld [vmem:[%s378_s12 + $0x10] sm:$0xff]  ;;  %p420_p7 = scmp.lt.s32.totalorder %s1112_s10, 1  ;;  %vm563_vm1 = vcmask 7168   ;;  %v1128_v20 = vmov 0.0  }
  0x5b   : > { %934 = vmatprep.subr.bf16.mxu1 %v1127_v5  ;;  %v910_v9 = vpack.c.bf16 %v426_v7, %v425_v6  ;;  %v428_v10 = vld [vmem:[%s378_s12 + $0x18] sm:$0xff]  ;;  %v429_v11 = vld [vmem:[%s1391_s1] sm:$0xff]  ;;  %v435_v14 = vld [vmem:[%s1392_s2 + $0x10] sm:$0xff] }
  0x5c   : > { %942 = vmatpush3.bf16.msra.mxu1 %v1127_v5  ;;  %v914_v12 = vpack.c.bf16 %v428_v10, %v427_v8  ;;  %860 = vmatprep.mubr.msk.f32.mxu0 %vm457_vm0, %v429_v11  ;;  %v433_v13 = vld [vmem:[%s1392_s2] sm:$0xff]  ;;  %v434_v15 = vld [vmem:[%s1392_s2 + $0x8] sm:$0xff]  ;;  %v436_v16 = vld [vmem:[%s1392_s2 + $0x18] sm:$0xff]  ;;  %s1417_s10 = smov (!%p420_p7, %s1112_s10), 1 }
  0x5d   : > { %935 = vmatprep.subr.bf16.mxu1 %v1127_v5  ;;  %911 = vmatprep.subr.bf16.mxu0 %v910_v9  ;;  %v430_v17 = vld [vmem:[%s1391_s1 + $0x8] sm:$0xff]  ;;  %v431_v18 = vld [vmem:[%s1391_s1 + $0x10] sm:$0xff]  ;;  %v432_v19 = vld [vmem:[%s1391_s1 + $0x18] sm:$0xff]  ;;  %s819_s13 = sshll.u32 %s1417_s10, 6 }
  0x5e   : > { %439 = vperm.xlu1 %1017, %v433_v13   ;;  %913 = vmatpush3.bf16.msra.mxu0 %v910_v9  ;;  %s1333_s30 = scalar_lea.vmem %s1399_s9, %s819_s13 }
  0x5f   : > { %449 = vperm.xlu0 %1016, %v435_v14   ;;  %915 = vmatprep.subr.bf16.mxu0 %v914_v12  ;;  %565 = vst.msk [vmem:[%s1333_s30 + $0x8] sm:$0xff] %vm563_vm1, %v1128_v20  ;;  %564 = vst.msk [vmem:[%s1333_s30] sm:$0xff] %vm563_vm1, %v1128_v20 }
  0x60   : > { %943 = vmatpush3.bf16.msra.mxu1 %v1127_v5  ;;  %566 = vst.msk [vmem:[%s1333_s30 + $0x10] sm:$0xff] %vm563_vm1, %v1128_v20  ;;  %567 = vst.msk [vmem:[%s1333_s30 + $0x18] sm:$0xff] %vm563_vm1, %v1128_v20 }
  0x61   : > { %936 = vmatprep.subr.bf16.mxu1 %v1127_v5  ;;  %568 = vst.msk [vmem:[%s1333_s30 + $0x20] sm:$0xff] %vm563_vm1, %v1128_v20  ;;  %569 = vst.msk [vmem:[%s1333_s30 + $0x28] sm:$0xff] %vm563_vm1, %v1128_v20 }
  0x62   : > { %444 = vperm.xlu1 %1017, %v434_v15   ;;  %917 = vmatpush3.bf16.msra.mxu0 %v914_v12  ;;  %570 = vst.msk [vmem:[%s1333_s30 + $0x30] sm:$0xff] %vm563_vm1, %v1128_v20  ;;  %571 = vst.msk [vmem:[%s1333_s30 + $0x38] sm:$0xff] %vm563_vm1, %v1128_v20 }
  0x63   : > { %454 = vperm.xlu0 %1016, %v436_v16   ;;  %918 = vmatprep.subr.bf16.mxu0 %v1127_v5 }
  0x64   : > { %944 = vmatpush3.bf16.msra.mxu1 %v1127_v5 }
  0x65   : > { %937 = vmatprep.subr.bf16.mxu1 %v1127_v5  ;;  %861 = vmatmul.mubr.msk.f32.vlgmr.msra.gmra.mrb[0].mxu0 %vm457_vm0, %v430_v17 }
  0x66   : > { %863 = vmatprep.mubr.msk.f32.mxu0 %vm457_vm0, %v431_v18  ;;  %919 = vmatpush3.bf16.msra.mxu0 %v1127_v5  ;;  %v577_v41 = vld [vmem:[%s1333_s30 + $0x8] sm:$0xff]  ;;  %v576_v42 = vld [vmem:[%s1333_s30] sm:$0xff] }
  0x67   : > { %920 = vmatprep.subr.bf16.mxu0 %v1127_v5  ;;  %v579_v47 = vld [vmem:[%s1333_s30 + $0x18] sm:$0xff]  ;;  %v578_v48 = vld [vmem:[%s1333_s30 + $0x10] sm:$0xff] }
  0x68   : > { %945 = vmatpush3.bf16.msra.mxu1 %v1127_v5  ;;  %v581_v53 = vld [vmem:[%s1333_s30 + $0x28] sm:$0xff]  ;;  %v580_v54 = vld [vmem:[%s1333_s30 + $0x20] sm:$0xff] }
  0x69   : > { %938 = vmatprep.subr.bf16.mxu1 %v1127_v5  ;;  %864 = vmatmul.mubr.msk.f32.gmra.mrb[2].mxu0 %vm457_vm0, %v432_v19  ;;  %v583_v59 = vld [vmem:[%s1333_s30 + $0x38] sm:$0xff]  ;;  %v582_v60 = vld [vmem:[%s1333_s30 + $0x30] sm:$0xff] }
  0x6a   : > { %921 = vmatpush3.bf16.msra.mxu0 %v1127_v5 }
  0x6b   : > { %922 = vmatprep.subr.bf16.mxu0 %v1127_v5 }
  0x6c   : > { %946 = vmatpush3.bf16.msra.mxu1 %v1127_v5 }
  0x6d   : > { %939 = vmatprep.subr.bf16.mxu1 %v1127_v5 }
  0x6e   : > { %923 = vmatpush3.bf16.msra.mxu0 %v1127_v5 }
  0x6f   : > { %924 = vmatprep.subr.bf16.mxu0 %v1127_v5 }
  0x70   : > { %947 = vmatpush3.bf16.msra.mxu1 %v1127_v5 }
  0x71   : > { %940 = vmatprep.subr.bf16.mxu1 %v1127_v5 }
  0x72   : > { %925 = vmatpush3.bf16.msra.mxu0 %v1127_v5 }
  0x73   : > { %926 = vmatprep.subr.bf16.mxu0 %v1127_v5 }
  0x74   : > { %948 = vmatpush3.bf16.msra.mxu1 %v1127_v5 }
  0x75   : > { %941 = vmatprep.subr.bf16.mxu1 %v1127_v5 }
  0x76   : > { %927 = vmatpush3.bf16.msra.mxu0 %v1127_v5 }
  0x77   : > { %928 = vmatprep.subr.bf16.mxu0 %v1127_v5 }
  0x78   : > { %949 = vmatpush3.bf16.msra.mxu1 %v1127_v5 }
  0x7a   : > { %929 = vmatpush3.bf16.msra.mxu0 %v1127_v5 }
  0x7b   : > { %930 = vmatprep.subr.bf16.mxu0 %v1127_v5 }
  0x7e   : > { %931 = vmatpush3.bf16.msra.mxu0 %v1127_v5 }
  0x7f   : > { %932 = vmatprep.subr.bf16.mxu0 %v1127_v5 }
  0x82   : > { %933 = vmatpush3.bf16.msra.mxu0 %v1127_v5 }
  0xdd   : > { %v440_v21 = vpop.permute.xlu1 %439 }
  0xde   : > { %v450_v22 = vpop.permute.xlu0 %449 }
  0xe1   : > { %v445_v23 = vpop.permute.xlu1 %444 }
  0xe2   : > { %v455_v29 = vpop.permute.xlu0 %454 }
 0x138   : > { %v862_v24 = vpop.f32.mrb[0].mxu0 }
 0x139   : > { %v542_v25 = vadd.f32 %v862_v24, %v445_v23  ;;  %v536_v26 = vpop.f32.mrb[1].mxu0 }
 0x13a   : > { %v537_v27 = vadd.f32 %v536_v26, %v440_v21 }
 0x13b   : > { %v556_v31 = vmax.f32 %v542_v25, 0.0 }
 0x13c   : > { %v555_v28 = vmax.f32 %v537_v27, 0.0  ;;  %v865_v30 = vpop.f32.mrb[2].mxu0 }
 0x13d   : > { %v552_v32 = vadd.f32 %v865_v30, %v455_v29  ;;  %v546_v33 = vpop.f32.mrb[3].mxu0  ;;  %v573_v38 = vmul.f32 %v556_v31, %v556_v31 }
 0x13e   : > { %v547_v34 = vadd.f32 %v546_v33, %v450_v22  ;;  %898 = vmatprep.mubr.f32.mxu0 %v555_v28  ;;  %v572_v37 = vmul.f32 %v555_v28, %v555_v28 }
 0x13f   : > { %899 = vmatmul.mubr.f32.vlgmr.msra.gmra.mrb[4].mxu0 %v556_v31  ;;  %v558_v36 = vmax.f32 %v552_v32, 0.0 }
 0x140   : > { %v557_v35 = vmax.f32 %v547_v34, 0.0 }
 0x141   : > { %v575_v40 = vmul.f32 %v558_v36, %v558_v36 }
 0x142   : > { %901 = vmatprep.mubr.f32.mxu1 %v557_v35  ;;  %v574_v39 = vmul.f32 %v557_v35, %v557_v35 }
 0x143   : > { %902 = vmatmul.mubr.f32.vlgmr.msra.gmra.mrb[0].mxu1 %v558_v36 }
 0x144   : > { %904 = vmatprep.mubr.f32.mxu1 %v572_v37 }
 0x147   : > { %905 = vmatmul.mubr.f32.gmra.mrb[2].mxu1 %v573_v38 }
 0x148   : > { %907 = vmatprep.mubr.f32.mxu1 %v574_v39 }
 0x14b   : > { %908 = vmatmul.mubr.f32.gmra.mrb[4].mxu1 %v575_v40 }
 0x212   : > { %v900_v43 = vpop.f32.mrb[4].mxu0 }
 0x213   : > { %v690_v44 = vadd.f32 %v900_v43, %v577_v41  ;;  %v650_v45 = vpop.f32.mrb[5].mxu0 }
 0x214   : > { %v689_v46 = vadd.f32 %v650_v45, %v576_v42 }
 0x215   : > { %699 = vst.msk [vmem:[%s1333_s30 + $0x8] sm:$0xff] %vm563_vm1, %v690_v44 }
 0x216   : > { %698 = vst.msk [vmem:[%s1333_s30] sm:$0xff] %vm563_vm1, %v689_v46  ;;  %v903_v49 = vpop.f32.mrb[0].mxu1 }
 0x217   : > { %v692_v50 = vadd.f32 %v903_v49, %v579_v47  ;;  %v660_v51 = vpop.f32.mrb[1].mxu1 }
 0x218   : > { %v691_v52 = vadd.f32 %v660_v51, %v578_v48 }
 0x219   : > { %701 = vst.msk [vmem:[%s1333_s30 + $0x18] sm:$0xff] %vm563_vm1, %v692_v50 }
 0x21a   : > { %700 = vst.msk [vmem:[%s1333_s30 + $0x10] sm:$0xff] %vm563_vm1, %v691_v52  ;;  %v906_v55 = vpop.f32.mrb[2].mxu1 }
 0x21b   : > { %v694_v56 = vadd.f32 %v906_v55, %v581_v53  ;;  %v670_v57 = vpop.f32.mrb[3].mxu1 }
 0x21c   : > { %v693_v58 = vadd.f32 %v670_v57, %v580_v54 }
 0x21d   : > { %703 = vst.msk [vmem:[%s1333_s30 + $0x28] sm:$0xff] %vm563_vm1, %v694_v56 }
 0x21e   : > { %702 = vst.msk [vmem:[%s1333_s30 + $0x20] sm:$0xff] %vm563_vm1, %v693_v58  ;;  %v909_v61 = vpop.f32.mrb[4].mxu1 }
 0x21f   : > { %v696_v62 = vadd.f32 %v909_v61, %v583_v59  ;;  %v680_v63 = vpop.f32.mrb[5].mxu1 }
 0x220   : > { %v695_v0 = vadd.f32 %v680_v63, %v582_v60 }
 0x221   : > { %705 = vst.msk [vmem:[%s1333_s30 + $0x38] sm:$0xff] %vm563_vm1, %v696_v62 }
 0x222   : > { %704 = vst.msk [vmem:[%s1333_s30 + $0x30] sm:$0xff] %vm563_vm1, %v695_v0 }
 0x223 PF: > { %s21_s6 = sadd.s32 1, %s1120_s6   ;;  %s1410_s30 = smov %s1108_s4 }
 0x224   : > { %p18_p11 = scmp.ge.s32.totalorder %s21_s6, 4   ;;  %s1411_s4 = smov %s1229_s17 }
 0x225   : > { %s1412_s10 = smov %s1116_s11  ;;  %s1413_s11 = smov %s1415_s8 }
 0x226   :  { %20 = sbr.rel (!%p18_p11) target bundleno = 4 (0x4), region = 142 }
 0x22d   :  { %727 = vsyncpa [#allocation4], 1 }
 0x22e   :  { %729 = vsyncpa [#allocation4 + $0x1], 1 }
 0x22f   :  { %730 = vsyncpa [#allocation6], 1 }

</bundles_post_ra>
